<compile_context>
chip_gen: v7x
topology: tpu7x:2x2x1
jax: 0.10.0
libtpu: 0.0.40
codegen_flags: <defaults>
</compile_context>

<pallas_src>
import functools

import jax
import jax.numpy as jnp
from jax.experimental import pallas as pl
from jax.experimental.pallas import tpu as pltpu

BN_EPS = 1e-5
LANE = 128


def _round_up(x, m):
    return (x + m - 1) // m * m


def _pick_tile(total, max_tile, quantum):
    """Largest multiple of `quantum` <= max_tile that divides `total`
    (total is assumed to be a multiple of quantum)."""
    t = min(max_tile, total)
    t = max((t // quantum) * quantum, quantum)
    while total % t != 0:
        t -= quantum
    return t


# ----------------------------------------------------------------------------
# Pass A: tiled (patches @ weight) + conv bias, pre-BN output + online BN stats
# ----------------------------------------------------------------------------
def _conv_stats_kernel(p_ref, w_ref, cb_ref, y_ref, sum_ref, sq_ref, acc_ref,
                       *, m_real):
    m = pl.program_id(0)
    k = pl.program_id(1)

    @pl.when((m == 0) & (k == 0))
    def _init_stats():
        sum_ref[...] = jnp.zeros_like(sum_ref)
        sq_ref[...] = jnp.zeros_like(sq_ref)

    @pl.when(k == 0)
    def _init_acc():
        acc_ref[...] = jnp.zeros_like(acc_ref)

    # bf16 x bf16 on the MXU, f32 accumulation.
    acc_ref[...] += jnp.dot(p_ref[...], w_ref[...],
                            preferred_element_type=jnp.float32)

    @pl.when(k == pl.num_programs(1) - 1)
    def _finalize():
        acc = acc_ref[...] + cb_ref[...]          # (tile_m, Cpad) f32
        y_ref[...] = acc.astype(y_ref.dtype)      # pre-BN activation (bf16)

        # Online BN statistics: mask rows beyond the real M (zero-pad rows).
        tile_m = acc.shape[0]
        row = jax.lax.broadcasted_iota(jnp.int32, (tile_m, 1), 0)
        limit = m_real - m * tile_m
        valid = (row < limit).astype(jnp.float32)
        av = acc * valid
        sum_ref[...] += jnp.sum(av, axis=0, keepdims=True)
        sq_ref[...] += jnp.sum(av * av, axis=0, keepdims=True)


# ----------------------------------------------------------------------------
# Pass B: BatchNorm normalize (global batch stats) + gamma/beta (+ ReLU)
# ----------------------------------------------------------------------------
def _bn_act_kernel(y_ref, sum_ref, sq_ref, g_ref, b_ref, o_ref,
                   *, m_real, eps, relu):
    inv_m = 1.0 / float(m_real)
    mean = sum_ref[...] * inv_m
    var = jnp.maximum(sq_ref[...] * inv_m - mean * mean, 0.0)
    scale = g_ref[...] * jax.lax.rsqrt(var + eps)
    shift = b_ref[...] - mean * scale
    out = y_ref[...].astype(jnp.float32) * scale + shift   # f32 epilogue math
    if relu:
        out = jnp.maximum(out, 0.0)
    o_ref[...] = out.astype(o_ref.dtype)


# ----------------------------------------------------------------------------
# One Conv2d(3,3,stride,pad=1) + BatchNorm2d (+ReLU) block
# ----------------------------------------------------------------------------
def conv3x3_bn_act_block(x_nhwc, w_hwio, conv_bias, gamma, beta, *,
                         stride, relu, tile_m_max=256, tile_k_max=512):
    N, H, W, cin_used = x_nhwc.shape              # cin_used may be lane-padded
    KH, KW, cin_real, cout_real = w_hwio.shape
    pad = 1
    OH = (H + 2 * pad - KH) // stride + 1
    OW = (W + 2 * pad - KW) // stride + 1
    cout_p = _round_up(cout_real, LANE)

    # -------- wrapper glue (data movement only): im2col in bf16 --------
    x_bf = x_nhwc.astype(jnp.bfloat16)
    xp = jnp.pad(x_bf, ((0, 0), (pad, pad), (pad, pad), (0, 0)))
    cols = [xp[:, kh:kh + stride * OH:stride, kw:kw + stride * OW:stride, :]
            for kh in range(KH) for kw in range(KW)]
    patches = jnp.concatenate(cols, axis=-1)      # (N, OH, OW, KH*KW*cin_used)

    M = N * OH * OW
    K = KH * KW * cin_used
    tile_k = _pick_tile(_round_up(K, LANE), tile_k_max, LANE)
    K_pad = _round_up(K, tile_k)
    tile_m = min(tile_m_max, _round_up(M, 8))
    M_pad = _round_up(M, tile_m)
    num_m = M_pad // tile_m
    num_k = K_pad // tile_k

    P = patches.reshape(M, K)
    P = jnp.pad(P, ((0, M_pad - M), (0, K_pad - K)))            # bf16, lane-dense

    # Weights: pad Cin to the (possibly padded) input channel count, Cout to
    # a multiple of 128, then flatten to (K_pad, cout_p) matching patch order.
    w = jnp.pad(w_hwio, ((0, 0), (0, 0),
                         (0, cin_used - cin_real), (0, cout_p - cout_real)))
    Wm = w.reshape(KH * KW * cin_used, cout_p)
    Wm = jnp.pad(Wm, ((0, K_pad - K), (0, 0))).astype(jnp.bfloat16)

    cb = jnp.pad(conv_bias, (0, cout_p - cout_real)).reshape(1, cout_p).astype(jnp.float32)
    g = jnp.pad(gamma, (0, cout_p - cout_real)).reshape(1, cout_p).astype(jnp.float32)
    b = jnp.pad(beta, (0, cout_p - cout_real)).reshape(1, cout_p).astype(jnp.float32)

    cost_a = pl.CostEstimate(
        flops=int(2 * M_pad * K_pad * cout_p),
        transcendentals=0,
        bytes_accessed=int(M_pad * K_pad * 2 + num_m * K_pad * cout_p * 2
                           + M_pad * cout_p * 2 + 2 * cout_p * 4),
    )

    # ---------------- Pass A ----------------
    y_pre, s_sum, s_sq = pl.pallas_call(
        functools.partial(_conv_stats_kernel, m_real=M),
        out_shape=(
            jax.ShapeDtypeStruct((M_pad, cout_p), jnp.bfloat16),
            jax.ShapeDtypeStruct((1, cout_p), jnp.float32),
            jax.ShapeDtypeStruct((1, cout_p), jnp.float32),
        ),
        grid_spec=pltpu.PrefetchScalarGridSpec(
            num_scalar_prefetch=0,
            grid=(num_m, num_k),
            in_specs=[
                pl.BlockSpec((tile_m, tile_k), lambda m, k: (m, k)),
                pl.BlockSpec((tile_k, cout_p), lambda m, k: (k, 0)),
                pl.BlockSpec((1, cout_p), lambda m, k: (0, 0)),
            ],
            out_specs=(
                pl.BlockSpec((tile_m, cout_p), lambda m, k: (m, 0)),
                pl.BlockSpec((1, cout_p), lambda m, k: (0, 0)),
                pl.BlockSpec((1, cout_p), lambda m, k: (0, 0)),
            ),
            scratch_shapes=[pltpu.VMEM((tile_m, cout_p), jnp.float32)],
        ),
        compiler_params=pltpu.CompilerParams(
            # M axis carries the running sum/sumsq -> must stay "arbitrary"
            # (sequential).  "parallel" here would break the BN statistics.
            dimension_semantics=("arbitrary", "arbitrary"),
            vmem_limit_bytes=32 * 1024 * 1024,
        ),
        cost_estimate=cost_a,
    )(P, Wm, cb)

    # ---------------- Pass B ----------------
    act = pl.pallas_call(
        functools.partial(_bn_act_kernel, m_real=M, eps=BN_EPS, relu=relu),
        out_shape=jax.ShapeDtypeStruct((M_pad, cout_p), jnp.bfloat16),
        grid_spec=pltpu.PrefetchScalarGridSpec(
            num_scalar_prefetch=0,
            grid=(num_m,),
            in_specs=[
                pl.BlockSpec((tile_m, cout_p), lambda m: (m, 0)),
                pl.BlockSpec((1, cout_p), lambda m: (0, 0)),
                pl.BlockSpec((1, cout_p), lambda m: (0, 0)),
                pl.BlockSpec((1, cout_p), lambda m: (0, 0)),
                pl.BlockSpec((1, cout_p), lambda m: (0, 0)),
            ],
            out_specs=pl.BlockSpec((tile_m, cout_p), lambda m: (m, 0)),
        ),
        compiler_params=pltpu.CompilerParams(
            dimension_semantics=("parallel",),
            vmem_limit_bytes=32 * 1024 * 1024,
        ),
    )(y_pre, s_sum, s_sq, g, b)

    # Drop M padding, restore image layout; keep lane-padded channels (they are
    # exactly zero) so the next layer stays lane-dense.
    return act[:M].reshape(N, OH, OW, cout_p)


# ----------------------------------------------------------------------------
# modStem forward: 5 blocks (ReLU after the first 4, none after the 5th)
# ----------------------------------------------------------------------------
def mod_stem_forward(x_nchw, params, strides, relus):
    x = jnp.transpose(x_nchw, (0, 2, 3, 1))        # NCHW -> NHWC
    for (w, cb, g, b), s, r in zip(params, strides, relus):
        x = conv3x3_bn_act_block(x, w, cb, g, b, stride=s, relu=r)
    cout_final = params[-1][0].shape[-1]
    x = x[..., :cout_final].astype(jnp.float32)    # drop channel padding
    return jnp.transpose(x, (0, 3, 1, 2))          # NHWC -> NCHW


# ----------------------------------------------------------------------------
# Pure-JAX f32 reference (sanity check for the Pallas path)
# ----------------------------------------------------------------------------
def mod_stem_reference(x_nchw, params, strides, relus):
    x = jnp.transpose(x_nchw, (0, 2, 3, 1))
    for (w, cb, g, b), s, r in zip(params, strides, relus):
        y = jax.lax.conv_general_dilated(
            x, w, window_strides=(s, s), padding=((1, 1), (1, 1)),
            dimension_numbers=("NHWC", "HWIO", "NHWC"),
        ) + cb
        mean = jnp.mean(y, axis=(0, 1, 2), keepdims=True)
        var = jnp.mean((y - mean) ** 2, axis=(0, 1, 2), keepdims=True)
        y = (y - mean) * jax.lax.rsqrt(var + BN_EPS) * g + b
        if r:
            y = jnp.maximum(y, 0.0)
        x = y
    return jnp.transpose(x, (0, 3, 1, 2))


if __name__ == "__main__":
    key = jax.random.PRNGKey(0)

    # Small but structure-preserving shapes: in_dim=3, out_dim=128, 32x32 input.
    in_dim, out_dim = 3, 128
    N, H, W = 2, 32, 32
    chans = [in_dim, out_dim // 8, out_dim // 4, out_dim // 2, out_dim, out_dim]
    strides = [2, 2, 2, 2, 1]
    relus = [True, True, True, True, False]   # no activation after the final BN

    params = []
    for li in range(5):
        cin, cout = chans[li], chans[li + 1]
        key, k1, k2, k3, k4 = jax.random.split(key, 5)
        w = jax.random.normal(k1, (3, 3, cin, cout), jnp.float32) / (9.0 * cin) ** 0.5
        cb = 0.1 * jax.random.normal(k2, (cout,), jnp.float32)
        gamma = 1.0 + 0.1 * jax.random.normal(k3, (cout,), jnp.float32)
        beta = 0.1 * jax.random.normal(k4, (cout,), jnp.float32)
        params.append((w, cb, gamma, beta))

    key, kx = jax.random.split(key)
    x = jax.random.normal(kx, (N, in_dim, H, W), jnp.float32)

    y = jax.block_until_ready(mod_stem_forward(x, params, strides, relus))
    y_ref = jax.block_until_ready(mod_stem_reference(x, params, strides, relus))

    assert y.shape == (N, out_dim, H // 16, W // 16), y.shape
    max_err = float(jnp.max(jnp.abs(y - y_ref)))
    rel_err = float(jnp.linalg.norm(y - y_ref) /
                    (jnp.linalg.norm(y_ref) + 1e-12))
    # bf16 MXU operands + bf16 activation chaining vs the f32 reference:
    # allow small (few %) numeric drift; structural bugs would be O(1).
    assert max_err < 0.12 and rel_err < 0.03, (max_err, rel_err)

    print("KERNEL_OK")
</pallas_src>

<mosaic_0001>
module attributes {stable_mosaic.version = 11 : i64} {
  func.func @_conv_stats_kernel(%arg0: i32, %arg1: i32, %arg2: memref<256x128xbf16, #tpu.memory_space<vmem>>, %arg3: memref<128x128xbf16, #tpu.memory_space<vmem>>, %arg4: memref<1x128xf32, #tpu.memory_space<vmem>>, %arg5: memref<256x128xbf16, #tpu.memory_space<vmem>>, %arg6: memref<1x128xf32, #tpu.memory_space<vmem>>, %arg7: memref<1x128xf32, #tpu.memory_space<vmem>>, %arg8: memref<256x128xf32, #tpu.memory_space<vmem>>) attributes {dimension_semantics = [#tpu.dimension_semantics<arbitrary>, #tpu.dimension_semantics<arbitrary>], iteration_bounds = array<i64: 2, 1>, scalar_prefetch = 0 : i64, scratch_operands = 1 : i64, tpu.core_type = #tpu.core_type<tc>, window_params = [{transform_indices = @transform_0, window_bounds = array<i64: 256, 128>}, {transform_indices = @transform_1, window_bounds = array<i64: 128, 128>}, {pipeline_mode = #tpu.pipeline_mode<synchronous>, transform_indices = @transform_2, window_bounds = array<i64: 1, 128>}, {transform_indices = @transform_3, window_bounds = array<i64: 256, 128>}, {pipeline_mode = #tpu.pipeline_mode<synchronous>, transform_indices = @transform_4, window_bounds = array<i64: 1, 128>}, {pipeline_mode = #tpu.pipeline_mode<synchronous>, transform_indices = @transform_5, window_bounds = array<i64: 1, 128>}]} {
    %c0_i32 = arith.constant 0 : i32
    %0 = arith.cmpi eq, %arg0, %c0_i32 : i32
    %c0_i32_0 = arith.constant 0 : i32
    %1 = arith.cmpi eq, %arg1, %c0_i32_0 : i32
    %2 = arith.andi %0, %1 : i1
    %3 = arith.extui %2 : i1 to i32
    %c0_i32_1 = arith.constant 0 : i32
    %4 = arith.cmpi ne, %3, %c0_i32_1 : i32
    scf.if %4 {
      %cst_13 = arith.constant 0.000000e+00 : f32
      %17 = vector.broadcast %cst_13 : f32 to vector<1x128xf32>
      %c0_14 = arith.constant 0 : index
      %c0_15 = arith.constant 0 : index
      %18 = vector.load %arg6[%c0_14, %c0_15] : memref<1x128xf32, #tpu.memory_space<vmem>>, vector<1x128xf32>
      tpu.vector_store %arg6[%c0_14, %c0_15], %17 {strides = array<i32>} : memref<1x128xf32, #tpu.memory_space<vmem>>, vector<1x128xf32>,
      %cst_16 = arith.constant 0.000000e+00 : f32
      %19 = vector.broadcast %cst_16 : f32 to vector<1x128xf32>
      %c0_17 = arith.constant 0 : index
      %c0_18 = arith.constant 0 : index
      %20 = vector.load %arg7[%c0_17, %c0_18] : memref<1x128xf32, #tpu.memory_space<vmem>>, vector<1x128xf32>
      tpu.vector_store %arg7[%c0_17, %c0_18], %19 {strides = array<i32>} : memref<1x128xf32, #tpu.memory_space<vmem>>, vector<1x128xf32>,
    } else {
    }
    %c0_i32_2 = arith.constant 0 : i32
    %5 = arith.cmpi eq, %arg1, %c0_i32_2 : i32
    %6 = arith.extui %5 : i1 to i32
    %c0_i32_3 = arith.constant 0 : i32
    %7 = arith.cmpi ne, %6, %c0_i32_3 : i32
    scf.if %7 {
      %cst_13 = arith.constant 0.000000e+00 : f32
      %17 = vector.broadcast %cst_13 : f32 to vector<256x128xf32>
      %c0_14 = arith.constant 0 : index
      %c0_15 = arith.constant 0 : index
      %18 = vector.load %arg8[%c0_14, %c0_15] : memref<256x128xf32, #tpu.memory_space<vmem>>, vector<256x128xf32>
      tpu.vector_store %arg8[%c0_14, %c0_15], %17 {strides = array<i32>} : memref<256x128xf32, #tpu.memory_space<vmem>>, vector<256x128xf32>,
    } else {
    }
    %c0 = arith.constant 0 : index
    %c0_4 = arith.constant 0 : index
    %8 = vector.load %arg8[%c0, %c0_4] : memref<256x128xf32, #tpu.memory_space<vmem>>, vector<256x128xf32>
    %c0_5 = arith.constant 0 : index
    %c0_6 = arith.constant 0 : index
    %9 = vector.load %arg2[%c0_5, %c0_6] : memref<256x128xbf16, #tpu.memory_space<vmem>>, vector<256x128xbf16>
    %c0_7 = arith.constant 0 : index
    %c0_8 = arith.constant 0 : index
    %10 = vector.load %arg3[%c0_7, %c0_8] : memref<128x128xbf16, #tpu.memory_space<vmem>>, vector<128x128xbf16>
    %cst = arith.constant dense<0.000000e+00> : vector<256x128xf32>
    %11 = tpu.matmul %9, %10, %cst {dimension_numbers = #tpu.dot_dimension_numbers<[1], [0], [0], [1], [0, 0, 1, 1], [], []>} : vector<256x128xbf16>, vector<128x128xbf16>, vector<256x128xf32> -> vector<256x128xf32>
    %12 = arith.addf %8, %11 : vector<256x128xf32>
    %c0_9 = arith.constant 0 : index
    %c0_10 = arith.constant 0 : index
    %13 = vector.load %arg8[%c0_9, %c0_10] : memref<256x128xf32, #tpu.memory_space<vmem>>, vector<256x128xf32>
    tpu.vector_store %arg8[%c0_9, %c0_10], %12 {strides = array<i32>} : memref<256x128xf32, #tpu.memory_space<vmem>>, vector<256x128xf32>,
    %c0_i32_11 = arith.constant 0 : i32
    %14 = arith.cmpi eq, %arg1, %c0_i32_11 : i32
    %15 = arith.extui %14 : i1 to i32
    %c0_i32_12 = arith.constant 0 : i32
    %16 = arith.cmpi ne, %15, %c0_i32_12 : i32
    scf.if %16 {
      %c0_13 = arith.constant 0 : index
      %c0_14 = arith.constant 0 : index
      %17 = vector.load %arg8[%c0_13, %c0_14] : memref<256x128xf32, #tpu.memory_space<vmem>>, vector<256x128xf32>
      %c0_15 = arith.constant 0 : index
      %c0_16 = arith.constant 0 : index
      %18 = vector.load %arg4[%c0_15, %c0_16] : memref<1x128xf32, #tpu.memory_space<vmem>>, vector<1x128xf32>
      %19 = vector.broadcast %18 : vector<1x128xf32> to vector<256x128xf32>
      %20 = arith.addf %17, %19 : vector<256x128xf32>
      %21 = arith.truncf %20 : vector<256x128xf32> to vector<256x128xbf16>
      %c0_17 = arith.constant 0 : index
      %c0_18 = arith.constant 0 : index
      %22 = vector.load %arg5[%c0_17, %c0_18] : memref<256x128xbf16, #tpu.memory_space<vmem>>, vector<256x128xbf16>
      tpu.vector_store %arg5[%c0_17, %c0_18], %21 {strides = array<i32>} : memref<256x128xbf16, #tpu.memory_space<vmem>>, vector<256x128xbf16>,
      %23 = tpu.iota {dimensions = array<i32: 0>} : vector<256x1xi32>
      %c256_i32 = arith.constant 256 : i32
      %24 = arith.muli %arg0, %c256_i32 : i32
      %c512_i32 = arith.constant 512 : i32
      %25 = arith.subi %c512_i32, %24 : i32
      %26 = vector.broadcast %25 : i32 to vector<256x1xi32>
      %27 = arith.cmpi slt, %23, %26 : vector<256x1xi32>
      %28 = arith.extui %27 : vector<256x1xi1> to vector<256x1xi32>
      %29 = arith.sitofp %28 : vector<256x1xi32> to vector<256x1xf32>
      %30 = vector.broadcast %29 : vector<256x1xf32> to vector<256x128xf32>
      %31 = arith.mulf %20, %30 : vector<256x128xf32>
      %c0_19 = arith.constant 0 : index
      %c0_20 = arith.constant 0 : index
      %32 = vector.load %arg6[%c0_19, %c0_20] : memref<1x128xf32, #tpu.memory_space<vmem>>, vector<1x128xf32>
      %cst_21 = arith.constant dense<0.000000e+00> : vector<128xf32>
      %33 = vector.multi_reduction <add>, %31, %cst_21 [0] : vector<256x128xf32> to vector<128xf32>
      %34 = vector.shape_cast %33 : vector<128xf32> to vector<1x128xf32>
      %35 = arith.addf %32, %34 : vector<1x128xf32>
      %c0_22 = arith.constant 0 : index
      %c0_23 = arith.constant 0 : index
      %36 = vector.load %arg6[%c0_22, %c0_23] : memref<1x128xf32, #tpu.memory_space<vmem>>, vector<1x128xf32>
      tpu.vector_store %arg6[%c0_22, %c0_23], %35 {strides = array<i32>} : memref<1x128xf32, #tpu.memory_space<vmem>>, vector<1x128xf32>,
      %c0_24 = arith.constant 0 : index
      %c0_25 = arith.constant 0 : index
      %37 = vector.load %arg7[%c0_24, %c0_25] : memref<1x128xf32, #tpu.memory_space<vmem>>, vector<1x128xf32>
      %38 = arith.mulf %31, %31 : vector<256x128xf32>
      %cst_26 = arith.constant dense<0.000000e+00> : vector<128xf32>
      %39 = vector.multi_reduction <add>, %38, %cst_26 [0] : vector<256x128xf32> to vector<128xf32>
      %40 = vector.shape_cast %39 : vector<128xf32> to vector<1x128xf32>
      %41 = arith.addf %37, %40 : vector<1x128xf32>
      %c0_27 = arith.constant 0 : index
      %c0_28 = arith.constant 0 : index
      %42 = vector.load %arg7[%c0_27, %c0_28] : memref<1x128xf32, #tpu.memory_space<vmem>>, vector<1x128xf32>
      tpu.vector_store %arg7[%c0_27, %c0_28], %41 {strides = array<i32>} : memref<1x128xf32, #tpu.memory_space<vmem>>, vector<1x128xf32>,
    } else {
    }
    return
  }
  func.func @transform_0(%arg0: i32, %arg1: i32) -> (i32, i32) {
    %c0_i32 = arith.constant 0 : i32
    return %arg0, %arg1 : i32, i32
  }
  func.func @transform_1(%arg0: i32, %arg1: i32) -> (i32, i32) {
    %c0_i32 = arith.constant 0 : i32
    %c0_i32_0 = arith.constant 0 : i32
    return %arg1, %c0_i32 : i32, i32
  }
  func.func @transform_2(%arg0: i32, %arg1: i32) -> (i32, i32) {
    %c0_i32 = arith.constant 0 : i32
    %c0_i32_0 = arith.constant 0 : i32
    %c0_i32_1 = arith.constant 0 : i32
    return %c0_i32, %c0_i32_0 : i32, i32
  }
  func.func @transform_3(%arg0: i32, %arg1: i32) -> (i32, i32) {
    %c0_i32 = arith.constant 0 : i32
    %c0_i32_0 = arith.constant 0 : i32
    return %arg0, %c0_i32 : i32, i32
  }
  func.func @transform_4(%arg0: i32, %arg1: i32) -> (i32, i32) {
    %c0_i32 = arith.constant 0 : i32
    %c0_i32_0 = arith.constant 0 : i32
    %c0_i32_1 = arith.constant 0 : i32
    return %c0_i32, %c0_i32_0 : i32, i32
  }
  func.func @transform_5(%arg0: i32, %arg1: i32) -> (i32, i32) {
    %c0_i32 = arith.constant 0 : i32
    %c0_i32_0 = arith.constant 0 : i32
    %c0_i32_1 = arith.constant 0 : i32
    return %c0_i32, %c0_i32_0 : i32, i32
  }
}

</mosaic_0001>

<bundles_post_ra>
// kernel: tpu_custom_call.1
= control target key start
LH: loop header
LB: loop body
LE: loop exit
PB: predicated region body
PF: predicated region fallthrough
CT: control target
= control target key end

     0   :  { %11 = vsyncpa [#allocation4], 0  ;;  %s2721_s0 = inlined_call_operand.hbm [shape: bf16[512,128], index: 0, kind: input, shape index: {}]   ;;  %s2722_s1 = inlined_call_operand.hbm [shape: bf16[128,128], index: 1, kind: input, shape index: {}]   ;;  %s2723_s2 = inlined_call_operand.vmem [shape: f32[1,128], index: 2, kind: input, shape index: {}]   ;;  %s2724_s3 = inlined_call_operand.hbm [shape: bf16[512,128], index: 3, kind: output, shape index: {0}]   ;;  %s2725_s4 = inlined_call_operand.hbm [shape: f32[1,128], index: 4, kind: output, shape index: {1}]   ;;  %s2726_s5 = inlined_call_operand.hbm [shape: f32[1,128], index: 5, kind: output, shape index: {2}]  }
   0x1   :  { %13 = vsyncpa [#allocation4 + $0x1], 0 }
   0x2   :  { %14 = vsyncpa [#allocation7], 0 }
   0x3   :  { %15 = vsyncpa [#allocation5], 0 }
   0x4   :  { %17 = vsyncpa [#allocation5 + $0x1], 0 }
   0x5   :  { %18 = vsyncpa [#allocation10], 0  ;;  %s2125_s18 = smov 0   ;;  %s2127_s19 = smov 0  }
   0x6   :  { %s2129_s20 = smov 0   ;;  %s2131_s21 = smov 0  }
   0x7   :  { %s2133_s22 = smov 0   ;;  %s2135_s23 = smov 0  }
   0x8 LB: > { %s1435_s24 = sadd.s32 4294967295, %s2082_s23   ;;  %s1436_s25 = sadd.s32 4294967294, %s2082_s23   ;;  %s2082_s23 = sphi %s2135_s23, %s24_s23   ;;  %s2078_s22 = sphi %s2133_s22, %s2756_s22   ;;  %s2074_s21 = sphi %s2131_s21, %s2755_s21   ;;  %s2070_s20 = sphi %s2129_s20, %s2754_s20   ;;  %s2066_s19 = sphi %s2127_s19, %s2753_s19   ;;  %s2062_s18 = sphi %s2125_s18, %s2752_s18  }
   0x9   : > { %p58_p0 = scmp.ne.s32.totalorder %s2066_s19, %s2062_s18  ;;  %p2159_p1 = scmp.eq.s32.totalorder %s1435_s24, 0 }
   0xa   : > { %p2163_p2 = scmp.eq.s32.totalorder %s1435_s24, 1  ;;  %p135_p3 = scmp.eq.s32.totalorder %s1436_s25, 1 }
   0xb   : > { %s2734_s26 = scalar_select %p2159_p1, 1, 0 }
   0xc   : > { %s2735_s27 = scalar_select %p2163_p2, 1, 0 }
   0xd   : > { %p2169_p4 = por %p2159_p1, %p58_p0  ;;  %p1437_p5 = scmp.ge.s32.totalorder %s2082_s23, 1 }
   0xe   : > { %p2174_p6 = por %p135_p3, %p58_p0  ;;  %p184_p7 = scmp.lt.s32.totalorder %s2082_s23, 3 }
   0xf   : > { %s2736_s28 = scalar_select %p2169_p4, 1, 0 }
  0x10   : > { %s2737_s29 = scalar_select %p2174_p6, 1, 0 }
  0x11   : > { %p2179_p8 = pnand %p1437_p5, %p184_p7  ;;  %s2084_s6 = smov [#allocation6]  }
  0x12   : > { %s199_s7 = sshll.u32 %s2084_s6, 4  ;;  %s36_s9 = sadd.s32 1, %s2078_s22  ;;  %s200_s7 = int_to_ptr.vmem [resolvable:$true] %s199_s7 }
  0x13   : > { %s2738_s30 = scalar_select %p2179_p8, 1, 0 }
  0x14   : > { %p1781_p9 = pneg %p2179_p8  ;;  %s1882_s12 = scalar_lea.hbm %s2722_s1, 1024 }
  0x15   : > { %p1883_p12 = scmp.ne.s32.totalorder %s2722_s1, %s1882_s12  ;;  %p1889_p5 = scmp.lt.u32.totalorder %s1882_s12, %s2722_s1 }
  0x16   : > { %p2188_p11 = pnand %p1781_p9, %p2159_p1 }
  0x18   : > { %p1884_p13 = pneg %p2188_p11 }
  0x1a   : > { %p1885_p0 = pnand %p1884_p13, %p1883_p12 }
  0x1c   : > { %p1886_p3 = pneg %p1885_p0 }
  0x1e   : > { %p1891_p7 = pnand %p1889_p5, %p1886_p3 }
  0x20   : > { %1894 = shalt.err (!%p1891_p7)
}
  0x21   : > { %s1895_s17 = scalar_lea.vmem %s200_s7, 1024  ;;  %p1903_p1 = scmp.lt.s32.totalorder %s200_s7, %s200_s7 }
  0x22   : > { %p1896_p9 = scmp.ne.s32.totalorder %s200_s7, %s1895_s17  ;;  %p1904_p4 = scmp.lt.s32.totalorder %s1895_s17, %s1895_s17 }
  0x24   : > { %p1898_p10 = pnand %p1896_p9, %p1884_p13  ;;  %p1905_p8 = por %p1904_p4, %p1903_p1 }
  0x26   : > { %p1899_p6 = pneg %p1898_p10 }
  0x28   : > { %p1906_p2 = pnand %p1905_p8, %p1899_p6 }
  0x2a   : > { %1909 = shalt.err (!%p1906_p2)
}
  0x2b   : > { %s2732_s24 = smov 64   ;;  %s2733_s25 = smov 4  }
  0x2c   : > { %1784 = dma.hbm_to_vmem [thread:$0]  (!%p2188_p11), %s2722_s1, 1024, %s200_s7, [#allocation7], %s2732_s24, %s2732_s24, %s2733_s25  }
  0x2d   : > { %p38_p1 = scmp.ge.s32.totalorder %s36_s9, 2  ;;  %s45_s11 = sadd.s32 1, %s2070_s20 }
  0x2e   : > { %p52_p2 = scmp.ne.s32.totalorder %s2070_s20, %s2066_s19  ;;  %p53_p4 = scmp.eq.s32.totalorder %s2082_s23, 0 }
  0x2f   : > { %s2758_s9 = smov (%p38_p1, %s36_s9), 0  ;;  %p2741_p8 = scmp.ne.s32.totalorder %s2735_s27, 0 }
  0x30   : > { %p2218_p6 = por %p53_p4, %p52_p2  ;;  %s40_s13 = ssub.s32 %s2078_s22, %s2758_s9 }
  0x31   : > { %p2224_p10 = por %p2741_p8, %p52_p2  ;;  %p1794_p12 = scmp.lt.s32.totalorder %s2082_s23, 2 }
  0x32   : > { %p43_p11 = scmp.eq.s32.totalorder %s40_s13, 0  ;;  %s216_s7 = sand.u32 1, %s2070_s20  }
  0x33   : > { %s1440_s14 = sshll.u32 %s216_s7, 7  ;;  %s1547_s16 = sshll.u32 %s2078_s22, 11 }
  0x34   : > { %s2233_s15 = scalar_select %p43_p11, %s2070_s20, %s45_s11  }
  0x35   : > { %s2239_s10 = scalar_lea.hbm %s2721_s0, %s1547_s16  ;;  %s220_s24 = scalar_lea.vmem [#allocation3], %s1440_s14 }
  0x36   : > { %s228_s25 = sshll.u32 %s220_s24, 4  ;;  %p2245_p13 = pnand %p1794_p12, %p2218_p6  ;;  %s2241_s25 = int_to_ptr.vmem [resolvable:$true] %s228_s25 }
  0x37   : > { %s2249_s11 = scalar_lea.sflag [#allocation4], %s216_s7  ;;  %s1910_s17 = scalar_lea.hbm %s2239_s10, 2048 }
  0x38   : > { %p1911_p0 = scmp.ne.s32.totalorder %s2239_s10, %s1910_s17  ;;  %p1912_p3 = pneg %p2245_p13 }
  0x39   : > { %s1915_s12 = scalar_lea.hbm %s2721_s0, 4096  ;;  %p1916_p9 = scmp.lt.u32.totalorder %s2239_s10, %s2721_s0 }
  0x3a   : > { %p1913_p5 = pnand %p1912_p3, %p1911_p0  ;;  %p1917_p1 = scmp.lt.u32.totalorder %s1915_s12, %s1910_s17 }
  0x3b   : > { %p1919_p4 = scmp.lt.u32.totalorder %s1910_s17, %s2239_s10 }
  0x3c   : > { %p1914_p7 = pneg %p1913_p5  ;;  %p1918_p2 = por %p1917_p1, %p1916_p9 }
  0x3e   : > { %p1920_p6 = por %p1919_p4, %p1918_p2 }
  0x40   : > { %p1921_p8 = pnand %p1920_p6, %p1914_p7 }
  0x42   : > { %1924 = shalt.err (!%p1921_p8)
}
  0x43   : > { %s1925_s7 = scalar_lea.vmem %s2241_s25, 2048  ;;  %s2087_s24 = smov [#allocation3]  }
  0x44   : > { %p1926_p12 = scmp.ne.s32.totalorder %s2241_s25, %s1925_s7  ;;  %s1930_s14 = sshll.u32 %s2087_s24, 4  ;;  %s1931_s14 = int_to_ptr.vmem [resolvable:$false] %s1930_s14 }
  0x45   : > { %s1932_s16 = scalar_lea.vmem %s1931_s14, 4096  ;;  %p1933_p5 = scmp.lt.s32.totalorder %s2241_s25, %s1931_s14 }
  0x46   : > { %p1928_p11 = pnand %p1926_p12, %p1912_p3  ;;  %p1934_p9 = scmp.lt.s32.totalorder %s1932_s16, %s1925_s7 }
  0x48   : > { %p1929_p0 = pneg %p1928_p11  ;;  %p1935_p1 = por %p1934_p9, %p1933_p5 }
  0x4a   : > { %p1936_p2 = pnand %p1935_p1, %p1929_p0 }
  0x4c   : > { %1939 = shalt.err (!%p1936_p2)
}
  0x4d   : > { %s2744_s17 = smov 4   ;;  %s2745_s12 = smov 64  }
  0x4e   : > { %1788 = dma.hbm_to_vmem [thread:$0]  (!%p2245_p13), %s2239_s10, 2048, %s2241_s25, %s2249_s11, %s2745_s12, %s2745_s12, %s2744_s17  }
  0x4f   : > { %p2746_p3 = scmp.ne.s32.totalorder %s2738_s30, 0 }
  0x50   : > { %s2283_s6 = sand.u32 (!%p2746_p3), 1, %s2066_s19   ;;  %p2747_p7 = scmp.ne.s32.totalorder (!%p2746_p3), %s2736_s28, 0 }
  0x51   : > { %240 = sbr.rel (%p2746_p3) target bundleno = 477 (0x1dd), region = 32  ;;  %s1444_s7 = sshll.u32 (!%p2746_p3), %s2283_s6, 7 }
  0x52   : > { %s243_s24 = scalar_lea.sflag (!%p2746_p3), [#allocation4], %s2283_s6  ;;  %s2287_s14 = scalar_lea.vmem (!%p2746_p3), [#allocation3], %s1444_s7 }
  0x58   : > { %2045 = dma.done.wait (%p2747_p7), %s243_s24, 2048  }
  0x59   : > { %2047 = vsyncadd (%p2747_p7), %s243_s24, 4294965248  ;;  %p2748_p13 = scmp.ne.s32.totalorder %s2734_s26, 0 }
  0x5b   : > { %2049 = dma.done.wait (%p2748_p13), [#allocation7], 1024  }
  0x5c   : > { %2051 = vsyncadd (%p2748_p13), [#allocation7], 4294966272  ;;  %p281_p4 = scmp.eq.s32.totalorder %s2074_s21, 0  ;;  %s2298_s30 = scalar_lea.vmem [#allocation8], %s1444_s7 }
  0x5d   : > { %v2088_v0 = vmov (%p281_p4), 0.0  }
  0x5e   : > { %286 = sbr.rel (!%p281_p4) target bundleno = 101 (0x65), region = 44  ;;  %287 = vst [vmem:[#allocation9] sm:$0x1] (%p281_p4), %v2088_v0  ;;  %288 = vst [vmem:[#allocation11] sm:$0x1] (%p281_p4), %v2088_v0 }
  0x65 PF: > { %v1858_v1 = vld [vmem:[#allocation6] sm:$0xff]   ;;  %v1859_v2 = vld [vmem:[#allocation6 + $0x8] sm:$0xff]   ;;  %v1860_v3 = vld [vmem:[#allocation6 + $0x10] sm:$0xff]   ;;  %v1007_v25 = vlaneseq  ;;  %s1505_s26 = sshll.u32 %s2074_s21, 8  ;;  %v2089_v39 = vmov 0.0   ;;  %s1581_s13 = sshll.u32 %s2074_s21, 11 }
  0x66   : > { %1701 = vmatprep.subr.bf16.mxu0 %v1858_v1  ;;  %1749 = vmatprep.subr.bf16.mxu1 %v1858_v1  ;;  %v1861_v4 = vld [vmem:[#allocation6 + $0x18] sm:$0xff]   ;;  %v1866_v5 = vld [vmem:[%s2287_s14] sm:$0xff]   ;;  %v1863_v7 = vld [vmem:[#allocation6 + $0x28] sm:$0xff]   ;;  %s1041_s28 = ssub.s32 512, %s1505_s26  ;;  %s1297_s11 = sshll.u32 %s2298_s30, 4  ;;  %s2563_s11 = int_to_ptr.vmem [resolvable:$true] %s1297_s11 }
  0x67   : > { %1702 = vmatpush3.bf16.msra.mxu0 %v1858_v1  ;;  %1757 = vmatpush3.bf16.msra.mxu1 %v1858_v1  ;;  %v1862_v6 = vld [vmem:[#allocation6 + $0x20] sm:$0xff]   ;;  %v1864_v9 = vld [vmem:[#allocation6 + $0x30] sm:$0xff]   ;;  %v1865_v10 = vld [vmem:[#allocation6 + $0x38] sm:$0xff]   ;;  %v2317_v26 = vshrl.u32 %v1007_v25, 7  ;;  %v2320_v28 = vstv %s1041_s28  ;;  %s2561_s17 = scalar_lea.hbm %s2724_s3, %s1581_s13  ;;  %s1284_s12 = scalar_lea.sflag [#allocation5], %s2283_s6 }
  0x68   : > { %1703 = vmatprep.subr.bf16.mxu0 %v1859_v2  ;;  %1750 = vmatprep.subr.bf16.mxu1 %v1859_v2  ;;  %v1874_v8 = vld [vmem:[%s2287_s14 + $0x40] sm:$0xff]   ;;  %v1867_v11 = vld [vmem:[%s2287_s14 + $0x8] sm:$0xff]   ;;  %v1868_v13 = vld [vmem:[%s2287_s14 + $0x10] sm:$0xff]   ;;  %s1940_s7 = scalar_lea.vmem %s2563_s11, 2048  ;;  %s2090_s24 = smov [#allocation8]  }
  0x69   : > { %1717 = vmatprep.mubr.bf16.mxu0 %v1866_v5  ;;  %1733 = vmatprep.mubr.bf16.mxu1 %v1874_v8  ;;  %v1875_v12 = vld [vmem:[%s2287_s14 + $0x48] sm:$0xff]   ;;  %v1876_v14 = vld [vmem:[%s2287_s14 + $0x50] sm:$0xff]   ;;  %v1869_v15 = vld [vmem:[%s2287_s14 + $0x18] sm:$0xff]   ;;  %v1010_v27 = vadd.s32 16, %v2317_v26  ;;  %v1011_v29 = vadd.s32 24, %v2317_v26  ;;  %v1009_v30 = vadd.s32 8, %v2317_v26  ;;  %vm1043_vm1 = vcmp.lt.s32.totalorder %v2317_v26, %v2320_v28  ;;  %p1941_p6 = scmp.ne.s32.totalorder %s2563_s11, %s1940_s7 }
  0x6a   : > { %v1877_v16 = vld [vmem:[%s2287_s14 + $0x58] sm:$0xff]   ;;  %v1870_v17 = vld [vmem:[%s2287_s14 + $0x20] sm:$0xff]   ;;  %v1871_v19 = vld [vmem:[%s2287_s14 + $0x28] sm:$0xff]   ;;  %v1014_v31 = vadd.s32 48, %v2317_v26  ;;  %v1012_v32 = vadd.s32 32, %v2317_v26  ;;  %v1015_v33 = vadd.s32 56, %v2317_v26 }
  0x6b   : > { %1704 = vmatpush3.bf16.msra.mxu0 %v1859_v2  ;;  %1758 = vmatpush3.bf16.msra.mxu1 %v1859_v2  ;;  %v1878_v18 = vld [vmem:[%s2287_s14 + $0x60] sm:$0xff]   ;;  %v1879_v20 = vld [vmem:[%s2287_s14 + $0x68] sm:$0xff]   ;;  %v1872_v21 = vld [vmem:[%s2287_s14 + $0x30] sm:$0xff]   ;;  %v1013_v34 = vadd.s32 40, %v2317_v26  ;;  %v1018_v35 = vadd.s32 80, %v2317_v26  ;;  %v1016_v36 = vadd.s32 64, %v2317_v26  ;;  %vm1045_vm0 = vcmp.lt.s32.totalorder %v1010_v27, %v2320_v28  ;;  %p1942_p8 = pnand %p1941_p6, %p2224_p10 }
  0x6c   : > { %1705 = vmatprep.subr.bf16.mxu0 %v1860_v3  ;;  %1751 = vmatprep.subr.bf16.mxu1 %v1860_v3  ;;  %v1880_v22 = vld [vmem:[%s2287_s14 + $0x70] sm:$0xff]   ;;  %v1873_v23 = vld [vmem:[%s2287_s14 + $0x38] sm:$0xff]   ;;  %vm1046_vm2 = vcmp.lt.s32.totalorder %v1011_v29, %v2320_v28  ;;  %vm1044_vm3 = vcmp.lt.s32.totalorder %v1009_v30, %v2320_v28  ;;  %vm1049_vm4 = vcmp.lt.s32.totalorder %v1014_v31, %v2320_v28  ;;  %v1019_v37 = vadd.s32 88, %v2317_v26  ;;  %v2345_v38 = vld [vmem:[%s2723_s2] ss:$0 sm:$0xff] }
  0x6d   : > { %v1881_v24 = vld [vmem:[%s2287_s14 + $0x78] sm:$0xff]   ;;  %vm1047_vm5 = vcmp.lt.s32.totalorder %v1012_v32, %v2320_v28  ;;  %vm1050_vm6 = vcmp.lt.s32.totalorder %v1015_v33, %v2320_v28  ;;  %vm1048_vm7 = vcmp.lt.s32.totalorder %v1013_v34, %v2320_v28  ;;  %vm1053_vm8 = vcmp.lt.s32.totalorder %v1018_v35, %v2320_v28  ;;  %p1943_p12 = pneg %p1942_p8  ;;  %s1944_s14 = sshll.u32 %s2090_s24, 4  ;;  %s1945_s14 = int_to_ptr.vmem [resolvable:$false] %s1944_s14 }
  0x6e   : > { %vm1051_vm9 = vcmp.lt.s32.totalorder %v1016_v36, %v2320_v28  ;;  %v1508_v40 = vsel %vm1045_vm0, 1.0, %v2089_v39  ;;  %v1506_v41 = vsel %vm1043_vm1, 1.0, %v2089_v39  ;;  %v1509_v42 = vsel %vm1046_vm2, 1.0, %v2089_v39  ;;  %s1946_s26 = scalar_lea.vmem %s1945_s14, 4096  ;;  %p1947_p11 = scmp.lt.s32.totalorder %s2563_s11, %s1945_s14 }
  0x6f   : > { %1706 = vmatpush3.bf16.msra.mxu0 %v1860_v3  ;;  %1759 = vmatpush3.bf16.msra.mxu1 %v1860_v3  ;;  %v1507_v43 = vsel %vm1044_vm3, 1.0, %v2089_v39  ;;  %v2352_v45 = vsel %vm1049_vm4, 1.0, %v2089_v39  ;;  %v2355_v46 = vsel %vm1047_vm5, 1.0, %v2089_v39  ;;  %v2358_v47 = vsel %vm1050_vm6, 1.0, %v2089_v39  ;;  %p1948_p0 = scmp.lt.s32.totalorder %s1946_s26, %s1940_s7 }
  0x70   : > { %1707 = vmatprep.subr.bf16.mxu0 %v1861_v4  ;;  %1752 = vmatprep.subr.bf16.mxu1 %v1861_v4  ;;  %v2361_v48 = vsel %vm1048_vm7, 1.0, %v2089_v39  ;;  %v2366_v51 = vsel %vm1053_vm8, 1.0, %v2089_v39  ;;  %v2371_v52 = vsel %vm1051_vm9, 1.0, %v2089_v39  ;;  %v1017_v53 = vadd.s32 72, %v2317_v26 }
  0x71   : > { %v1022_v54 = vadd.s32 112, %v2317_v26  ;;  %vm1054_vm10 = vcmp.lt.s32.totalorder %v1019_v37, %v2320_v28  ;;  %v1020_v59 = vadd.s32 96, %v2317_v26  ;;  %v1023_v5 = vadd.s32 120, %v2317_v26  ;;  %p1949_p5 = por %p1948_p0, %p1947_p11 }
  0x72   : > { %vm1052_vm11 = vcmp.lt.s32.totalorder %v1017_v53, %v2320_v28  ;;  %v1021_v8 = vadd.s32 104, %v2317_v26 }
  0x73   : > { %1708 = vmatpush3.bf16.msra.mxu0 %v1861_v4  ;;  %1760 = vmatpush3.bf16.msra.mxu1 %v1861_v4  ;;  %vm1057_vm12 = vcmp.lt.s32.totalorder %v1022_v54, %v2320_v28  ;;  %vm1055_vm13 = vcmp.lt.s32.totalorder %v1020_v59, %v2320_v28  ;;  %vm1058_vm14 = vcmp.lt.s32.totalorder %v1023_v5, %v2320_v28  ;;  %v1027_v5 = vadd.s32 152, %v2317_v26  ;;  %p1950_p9 = pnand %p1949_p5, %p1943_p12 }
  0x74   : > { %1709 = vmatprep.subr.bf16.mxu0 %v1862_v6  ;;  %1753 = vmatprep.subr.bf16.mxu1 %v1862_v6  ;;  %vm1056_vm15 = vcmp.lt.s32.totalorder %v1021_v8, %v2320_v28 }
  0x75   : > { %v2441_v53 = vsel %vm1056_vm15, 1.0, %v2089_v39  ;;  %vm1062_vm2 = vcmp.lt.s32.totalorder %v1027_v5, %v2320_v28 }
  0x77   : > { %1710 = vmatpush3.bf16.msra.mxu0 %v1862_v6  ;;  %1761 = vmatpush3.bf16.msra.mxu1 %v1862_v6 }
  0x78   : > { %1711 = vmatprep.subr.bf16.mxu0 %v1863_v7  ;;  %1754 = vmatprep.subr.bf16.mxu1 %v1863_v7 }
  0x7b   : > { %1712 = vmatpush3.bf16.msra.mxu0 %v1863_v7  ;;  %1762 = vmatpush3.bf16.msra.mxu1 %v1863_v7 }
  0x7c   : > { %1713 = vmatprep.subr.bf16.mxu0 %v1864_v9  ;;  %1755 = vmatprep.subr.bf16.mxu1 %v1864_v9 }
  0x7f   : > { %1714 = vmatpush3.bf16.msra.mxu0 %v1864_v9  ;;  %1763 = vmatpush3.bf16.msra.mxu1 %v1864_v9 }
  0x80   : > { %1715 = vmatprep.subr.bf16.mxu0 %v1865_v10  ;;  %1756 = vmatprep.subr.bf16.mxu1 %v1865_v10 }
  0x83   : > { %1716 = vmatpush3.bf16.msra.mxu0 %v1865_v10  ;;  %1764 = vmatpush3.bf16.msra.mxu1 %v1865_v10 }
  0x86   : > { %1718 = vmatmul.mubr.bf16.vlgmr.msra.gmra.mrb[0].mxu0 %v1867_v11  ;;  %1734 = vmatmul.mubr.bf16.vlgmr.msra.gmra.mrb[0].mxu1 %v1875_v12 }
  0x87   : > { %1721 = vmatprep.mubr.bf16.mxu0 %v1868_v13  ;;  %1737 = vmatprep.mubr.bf16.mxu1 %v1876_v14  ;;  %v2402_v13 = vsel %vm1054_vm10, 1.0, %v2089_v39 }
  0x8e   : > { %1722 = vmatmul.mubr.bf16.gmra.mrb[4].mxu0 %v1869_v15  ;;  %1738 = vmatmul.mubr.bf16.gmra.mrb[4].mxu1 %v1877_v16 }
  0x8f   : > { %1725 = vmatprep.mubr.bf16.mxu0 %v1870_v17  ;;  %1741 = vmatprep.mubr.bf16.mxu1 %v1878_v18 }
  0x96   : > { %1726 = vmatmul.mubr.bf16.gmra.mrb[8].mxu0 %v1871_v19  ;;  %1742 = vmatmul.mubr.bf16.gmra.mrb[8].mxu1 %v1879_v20 }
  0x97   : > { %1729 = vmatprep.mubr.bf16.mxu0 %v1872_v21  ;;  %1745 = vmatprep.mubr.bf16.mxu1 %v1880_v22  ;;  %v2413_v22 = vsel %vm1052_vm11, 1.0, %v2089_v39 }
  0x9e   : > { %1730 = vmatmul.mubr.bf16.gmra.mrb[12].mxu0 %v1873_v23  ;;  %1746 = vmatmul.mubr.bf16.gmra.mrb[12].mxu1 %v1881_v24  ;;  %v2418_v23 = vsel %vm1057_vm12, 1.0, %v2089_v39  ;;  %v2423_v24 = vsel %vm1055_vm13, 1.0, %v2089_v39 }
 0x159   : > { %v1719_v44 = vpop.f32.mrb[0].mxu0  ;;  %v1735_v49 = vpop.f32.mrb[0].mxu1 }
 0x15a   : > { %v582_v50 = vpop.f32.mrb[1].mxu0  ;;  %v646_v55 = vpop.f32.mrb[1].mxu1  ;;  %v817_v56 = vadd.f32 %v1719_v44, %v2345_v38  ;;  %v2381_v63 = vadd.f32 %v1735_v49, %v2345_v38 }
 0x15b   : > { %v815_v57 = vadd.f32 %v2345_v38, %v582_v50  ;;  %v1720_v58 = vpop.f32.mrb[2].mxu0  ;;  %v1736_v60 = vpop.f32.mrb[2].mxu1  ;;  %v2384_v0 = vadd.f32 %v2345_v38, %v646_v55 }
 0x15c   : > { %v818_v61 = vadd.f32 %v1720_v58, %v2345_v38  ;;  %v585_v62 = vpop.f32.mrb[3].mxu0  ;;  %v2387_v1 = vadd.f32 %v1736_v60, %v2345_v38  ;;  %v649_v2 = vpop.f32.mrb[3].mxu1  ;;  %v1141_v9 = vmul.f32 %v1508_v40, %v817_v56  ;;  %v2434_v40 = vsel %vm1058_vm14, 1.0, %v2089_v39 }
 0x15d   : > { %v1139_v3 = vmul.f32 %v1506_v41, %v815_v57  ;;  %v816_v4 = vadd.f32 %v2345_v38, %v585_v62  ;;  %v2392_v6 = vadd.f32 %v2345_v38, %v649_v2 }
 0x15e   : > { %v1590_v7 = vpack.c.bf16 %v818_v61, %v817_v56  ;;  %v1142_v12 = vmul.f32 %v1509_v42, %v818_v61  ;;  %v1630_v14 = vpack.c.bf16 %v2387_v1, %v2381_v63  ;;  %v1214_v27 = vmul.f32 %v1141_v9, %v1141_v9 }
 0x15f   : > { %v1585_v10 = vpack.c.bf16 %v816_v4, %v815_v57  ;;  %v1140_v11 = vmul.f32 %v1507_v43, %v816_v4  ;;  %v1625_v15 = vpack.c.bf16 %v2392_v6, %v2384_v0  ;;  %v1212_v16 = vmul.f32 %v1139_v3, %v1139_v3 }
 0x160   : > { %1662 = vst [vmem:[%s2298_s30 + $0x8] sm:$0xff] %v1590_v7   ;;  %1670 = vst [vmem:[%s2298_s30 + $0x48] sm:$0xff] %v1630_v14   ;;  %v1215_v34 = vmul.f32 %v1142_v12, %v1142_v12  ;;  %v1026_v61 = vadd.s32 144, %v2317_v26  ;;  %v1024_v4 = vadd.s32 128, %v2317_v26 }
 0x161   : > { %1586 = vst [vmem:[%s2298_s30] sm:$0xff] %v1585_v10   ;;  %v1172_v17 = vadd.f32 %v1140_v11, %v1139_v3  ;;  %v1213_v18 = vmul.f32 %v1140_v11, %v1140_v11  ;;  %v1723_v19 = vpop.f32.mrb[4].mxu0  ;;  %v1739_v20 = vpop.f32.mrb[4].mxu1  ;;  %1669 = vst [vmem:[%s2298_s30 + $0x40] sm:$0xff] %v1625_v15   ;;  %v1025_v11 = vadd.s32 136, %v2317_v26 }
 0x162   : > { %v598_v21 = vpop.f32.mrb[5].mxu0  ;;  %v662_v25 = vpop.f32.mrb[5].mxu1  ;;  %v821_v35 = vadd.f32 %v1723_v19, %v2345_v38  ;;  %v2444_v54 = vadd.f32 %v1739_v20, %v2345_v38  ;;  %vm1061_vm0 = vcmp.lt.s32.totalorder %v1026_v61, %v2320_v28  ;;  %vm1059_vm1 = vcmp.lt.s32.totalorder %v1024_v4, %v2320_v28 }
 0x163   : > { %v1173_v29 = vadd.f32 %v1172_v17, %v1141_v9  ;;  %v1244_v30 = vadd.f32 %v1213_v18, %v1212_v16  ;;  %v819_v31 = vadd.f32 %v2345_v38, %v598_v21  ;;  %v1724_v32 = vpop.f32.mrb[6].mxu0  ;;  %v1740_v33 = vpop.f32.mrb[6].mxu1  ;;  %v2447_v55 = vadd.f32 %v2345_v38, %v662_v25 }
 0x164   : > { %v822_v36 = vadd.f32 %v1724_v32, %v2345_v38  ;;  %v601_v37 = vpop.f32.mrb[7].mxu0  ;;  %v665_v41 = vpop.f32.mrb[7].mxu1  ;;  %v1145_v59 = vmul.f32 %v2352_v45, %v821_v35  ;;  %v2454_v62 = vadd.f32 %v1740_v33, %v2345_v38  ;;  %vm1060_vm3 = vcmp.lt.s32.totalorder %v1025_v11, %v2320_v28 }
 0x165   : > { %v1245_v42 = vadd.f32 %v1244_v30, %v1214_v27  ;;  %v1143_v43 = vmul.f32 %v2355_v46, %v819_v31  ;;  %v1174_v44 = vadd.f32 %v1173_v29, %v1142_v12  ;;  %v820_v49 = vadd.f32 %v2345_v38, %v601_v37 }
 0x166   : > { %v1600_v50 = vpack.c.bf16 %v822_v36, %v821_v35  ;;  %v2460_v7 = vadd.f32 %v2345_v38, %v665_v41  ;;  %v1146_v45 = vmul.f32 %v2358_v47, %v822_v36  ;;  %v1640_v17 = vpack.c.bf16 %v2454_v62, %v2444_v54 }
 0x167   : > { %v1175_v56 = vadd.f32 %v1174_v44, %v1143_v43  ;;  %v1216_v57 = vmul.f32 %v1143_v43, %v1143_v43  ;;  %v1246_v58 = vadd.f32 %v1245_v42, %v1215_v34  ;;  %v1595_v46 = vpack.c.bf16 %v820_v49, %v819_v31 }
 0x168   : > { %1664 = vst [vmem:[%s2298_s30 + $0x18] sm:$0xff] %v1600_v50   ;;  %v1144_v60 = vmul.f32 %v2361_v48, %v820_v49  ;;  %v1635_v47 = vpack.c.bf16 %v2460_v7, %v2447_v55  ;;  %v1218_v19 = vmul.f32 %v1145_v59, %v1145_v59  ;;  %1672 = vst [vmem:[%s2298_s30 + $0x58] sm:$0xff] %v1640_v17  }
 0x169   : > { %v1247_v2 = vadd.f32 %v1246_v58, %v1216_v57  ;;  %1663 = vst [vmem:[%s2298_s30 + $0x10] sm:$0xff] %v1595_v46   ;;  %v1727_v3 = vpop.f32.mrb[8].mxu0  ;;  %v1743_v8 = vpop.f32.mrb[8].mxu1  ;;  %v1219_v32 = vmul.f32 %v1146_v45, %v1146_v45 }
 0x16a   : > { %v1176_v9 = vadd.f32 %v1175_v56, %v1144_v60  ;;  %v1217_v48 = vmul.f32 %v1144_v60, %v1144_v60  ;;  %v614_v10 = vpop.f32.mrb[9].mxu0  ;;  %v2464_v12 = vpop.f32.mrb[9].mxu1  ;;  %v825_v14 = vadd.f32 %v1727_v3, %v2345_v38  ;;  %1671 = vst [vmem:[%s2298_s30 + $0x50] sm:$0xff] %v1635_v47   ;;  %v2484_v44 = vadd.f32 %v1743_v8, %v2345_v38 }
 0x16b   : > { %v823_v15 = vadd.f32 %v2345_v38, %v614_v10  ;;  %v1728_v16 = vpop.f32.mrb[10].mxu0  ;;  %v1744_v18 = vpop.f32.mrb[10].mxu1 }
 0x16c   : > { %v1177_v20 = vadd.f32 %v1176_v9, %v1145_v59  ;;  %v1248_v21 = vadd.f32 %v1247_v2, %v1217_v48  ;;  %v826_v25 = vadd.f32 %v1728_v16, %v2345_v38  ;;  %v617_v27 = vpop.f32.mrb[11].mxu0  ;;  %v681_v29 = vpop.f32.mrb[11].mxu1  ;;  %v1149_v36 = vmul.f32 %v2366_v51, %v825_v14 }
 0x16d   : > { %v1147_v30 = vmul.f32 %v2371_v52, %v823_v15  ;;  %v824_v31 = vadd.f32 %v2345_v38, %v617_v27  ;;  %v2490_v51 = vadd.f32 %v1744_v18, %v2345_v38  ;;  %v2495_v59 = vsel %vm1061_vm0, 1.0, %v2089_v39 }
 0x16e   : > { %v1249_v33 = vadd.f32 %v1248_v21, %v1218_v19  ;;  %v1178_v34 = vadd.f32 %v1177_v20, %v1146_v45  ;;  %v1610_v35 = vpack.c.bf16 %v826_v25, %v825_v14  ;;  %v1150_v49 = vmul.f32 %v2402_v13, %v826_v25 }
 0x16f   : > { %v1220_v37 = vmul.f32 %v1147_v30, %v1147_v30  ;;  %v1605_v41 = vpack.c.bf16 %v824_v31, %v823_v15  ;;  %v1148_v52 = vmul.f32 %v2413_v22, %v824_v31  ;;  %v1522_v13 = vsel %vm1059_vm1, 1.0, %v2089_v39 }
 0x170   : > { %v1179_v42 = vadd.f32 %v1178_v34, %v1147_v30  ;;  %v1250_v43 = vadd.f32 %v1249_v33, %v1219_v32  ;;  %1666 = vst [vmem:[%s2298_s30 + $0x28] sm:$0xff] %v1610_v35   ;;  %v1222_v2 = vmul.f32 %v1149_v36, %v1149_v36  ;;  %v2504_v45 = vsel %vm1062_vm2, 1.0, %v2089_v39 }
 0x171   : > { %1665 = vst [vmem:[%s2298_s30 + $0x20] sm:$0xff] %v1605_v41   ;;  %v1221_v50 = vmul.f32 %v1148_v52, %v1148_v52  ;;  %v1731_v56 = vpop.f32.mrb[12].mxu0  ;;  %v1747_v57 = vpop.f32.mrb[12].mxu1  ;;  %v1650_v61 = vpack.c.bf16 %v2490_v51, %v2484_v44  ;;  %v1223_v17 = vmul.f32 %v1150_v49, %v1150_v49  ;;  %v1523_v18 = vsel %vm1060_vm3, 1.0, %v2089_v39 }
 0x172   : > { %v1251_v22 = vadd.f32 %v1250_v43, %v1220_v37  ;;  %v1180_v58 = vadd.f32 %v1179_v42, %v1148_v52  ;;  %v630_v46 = vpop.f32.mrb[13].mxu0  ;;  %v694_v60 = vpop.f32.mrb[13].mxu1  ;;  %v829_v4 = vadd.f32 %v1731_v56, %v2345_v38  ;;  %v2518_v25 = vadd.f32 %v2345_v38, %v2464_v12 }
 0x173   : > { %v827_v3 = vadd.f32 %v2345_v38, %v630_v46  ;;  %v1732_v8 = vpop.f32.mrb[14].mxu0  ;;  %v1748_v9 = vpop.f32.mrb[14].mxu1  ;;  %1674 = vst [vmem:[%s2298_s30 + $0x68] sm:$0xff] %v1650_v61   ;;  %v2525_v34 = vadd.f32 %v2345_v38, %v681_v29  ;;  %v2536_v52 = vadd.f32 %v2345_v38, %v694_v60  ;;  %v2544_v29 = vadd.s32 168, %v2317_v26 }
 0x174   : > { %v1181_v48 = vadd.f32 %v1180_v58, %v1149_v36  ;;  %v1252_v10 = vadd.f32 %v1251_v22, %v1221_v50  ;;  %v830_v14 = vadd.f32 %v1732_v8, %v2345_v38  ;;  %v633_v15 = vpop.f32.mrb[15].mxu0  ;;  %v697_v16 = vpop.f32.mrb[15].mxu1  ;;  %v1153_v11 = vmul.f32 %v2418_v23, %v829_v4 }
 0x175   : > { %v1151_v47 = vmul.f32 %v2423_v24, %v827_v3  ;;  %v828_v5 = vadd.f32 %v2345_v38, %v633_v15  ;;  %v1028_v24 = vadd.s32 160, %v2317_v26  ;;  %v1155_v36 = vmul.f32 %v1522_v13, %v2384_v0 }
 0x176   : > { %v1253_v19 = vadd.f32 %v1252_v10, %v1222_v2  ;;  %v1182_v20 = vadd.f32 %v1181_v48, %v1150_v49  ;;  %v1620_v21 = vpack.c.bf16 %v830_v14, %v829_v4  ;;  %v1154_v35 = vmul.f32 %v2434_v40, %v830_v14 }
 0x177   : > { %v1224_v27 = vmul.f32 %v1151_v47, %v1151_v47  ;;  %v1615_v30 = vpack.c.bf16 %v828_v5, %v827_v3  ;;  %v1152_v31 = vmul.f32 %v2441_v53, %v828_v5  ;;  %v2531_v53 = vadd.f32 %v1747_v57, %v2345_v38 }
 0x178   : > { %v1183_v32 = vadd.f32 %v1182_v20, %v1151_v47  ;;  %v1254_v33 = vadd.f32 %v1253_v19, %v1223_v17  ;;  %1668 = vst [vmem:[%s2298_s30 + $0x38] sm:$0xff] %v1620_v21   ;;  %v1645_v23 = vpack.c.bf16 %v2525_v34, %v2518_v25  ;;  %v2541_v40 = vadd.s32 176, %v2317_v26 }
 0x179   : > { %1667 = vst [vmem:[%s2298_s30 + $0x30] sm:$0xff] %v1615_v30   ;;  %v1225_v12 = vmul.f32 %v1152_v31, %v1152_v31  ;;  %v2547_v0 = vadd.f32 %v1748_v9, %v2345_v38  ;;  %v2550_v42 = vadd.f32 %v2345_v38, %v697_v16  ;;  %v1226_v43 = vmul.f32 %v1153_v11, %v1153_v11 }
 0x17a   : > { %v1255_v37 = vadd.f32 %v1254_v33, %v1224_v27  ;;  %v1184_v41 = vadd.f32 %v1183_v32, %v1152_v31  ;;  %vm1063_vm4 = vcmp.lt.s32.totalorder %v1028_v24, %v2320_v28  ;;  %1673 = vst [vmem:[%s2298_s30 + $0x60] sm:$0xff] %v1645_v23   ;;  %v1228_v56 = vmul.f32 %v1155_v36, %v1155_v36 }
 0x17b   : > { %v1156_v57 = vmul.f32 %v1523_v18, %v2392_v6  ;;  %v1031_v22 = vadd.s32 184, %v2317_v26  ;;  %v1660_v58 = vpack.c.bf16 %v2547_v0, %v2531_v53  ;;  %v1227_v38 = vmul.f32 %v1154_v35, %v1154_v35 }
 0x17c   : > { %v1185_v49 = vadd.f32 %v1184_v41, %v1153_v11  ;;  %v1256_v50 = vadd.f32 %v1255_v37, %v1225_v12  ;;  %v1655_v6 = vpack.c.bf16 %v2550_v42, %v2536_v52  ;;  %vm1065_vm5 = vcmp.lt.s32.totalorder %v2541_v40, %v2320_v28 }
 0x17d   : > { %v1526_v60 = vsel %vm1063_vm4, 1.0, %v2089_v39  ;;  %vm1064_vm6 = vcmp.lt.s32.totalorder %v2544_v29, %v2320_v28  ;;  %1676 = vst [vmem:[%s2298_s30 + $0x78] sm:$0xff] %v1660_v58   ;;  %v1157_v2 = vmul.f32 %v2495_v59, %v2381_v63  ;;  %v1032_v61 = vadd.s32 192, %v2317_v26 }
 0x17e   : > { %v1257_v46 = vadd.f32 %v1256_v50, %v1226_v43  ;;  %v1186_v13 = vadd.f32 %v1185_v49, %v1154_v35  ;;  %1675 = vst [vmem:[%s2298_s30 + $0x70] sm:$0xff] %v1655_v6   ;;  %v1158_v9 = vmul.f32 %v2504_v45, %v2387_v1  ;;  %vm1066_vm7 = vcmp.lt.s32.totalorder %v1031_v22, %v2320_v28 }
 0x180   : > { %v1187_v3 = vadd.f32 %v1186_v13, %v1155_v36  ;;  %v1258_v8 = vadd.f32 %v1257_v46, %v1227_v38 }
 0x181   : > { %1953 = shalt.err (!%p1950_p9)
}
 0x182   : > { %s1954_s30 = scalar_lea.hbm %s2561_s17, 2048  ;;  %s1958_s10 = scalar_lea.hbm %s2724_s3, 4096 }
 0x183   : > { %p1955_p1 = scmp.ne.s32.totalorder %s2561_s17, %s1954_s30  ;;  %p1959_p7 = scmp.lt.u32.totalorder %s2561_s17, %s2724_s3 }
 0x184   : > { %p1960_p13 = scmp.lt.u32.totalorder %s1958_s10, %s1954_s30  ;;  %p1962_p6 = scmp.lt.u32.totalorder %s1954_s30, %s2561_s17 }
 0x185   : > { %p1956_p2 = pnand %p1955_p1, %p2224_p10 }
 0x186   : > { %p1961_p4 = por %p1960_p13, %p1959_p7 }
 0x187   : > { %p1957_p3 = pneg %p1956_p2 }
 0x188   : > { %p1963_p8 = por %p1962_p6, %p1961_p4 }
 0x18a   : > { %p1964_p12 = pnand %p1963_p8, %p1957_p3 }
 0x18c   : > { %1967 = shalt.err (!%p1964_p12)
}
 0x18d   : > { %s2091_s16 = smov 64   ;;  %s2092_s7 = smov 4   ;;  %v1259_v63 = vadd.f32 %v1258_v8, %v1228_v56  ;;  %v1188_v1 = vadd.f32 %v1187_v3, %v1156_v57  ;;  %v1229_v59 = vmul.f32 %v1156_v57, %v1156_v57  ;;  %v1159_v45 = vmul.f32 %v1526_v60, %v2447_v55 }
 0x18e   : > { %1771 = dma.vmem_to_hbm [thread:$0]  (%p2224_p10), %s2563_s11, 2048, %s2561_s17, %s1284_s12, %s2091_s16, %s2091_s16, %s2092_s7   ;;  %v1528_v48 = vsel %vm1065_vm5, 1.0, %v2089_v39  ;;  %v1527_v10 = vsel %vm1064_vm6, 1.0, %v2089_v39  ;;  %v1033_v4 = vadd.s32 200, %v2317_v26  ;;  %v1230_v14 = vmul.f32 %v1157_v2, %v1157_v2 }
 0x18f   : > { %v1189_v15 = vadd.f32 %v1188_v1, %v1157_v2  ;;  %v1260_v16 = vadd.f32 %v1259_v63, %v1229_v59  ;;  %vm1067_vm8 = vcmp.lt.s32.totalorder %v1032_v61, %v2320_v28  ;;  %v1231_v17 = vmul.f32 %v1158_v9, %v1158_v9  ;;  %s2093_s8 = smov [#allocation9]   ;;  %s2094_s11 = smov [#allocation11]  }
 0x190   : > { %v1529_v55 = vsel %vm1066_vm7, 1.0, %v2089_v39  ;;  %v1034_v47 = vadd.s32 208, %v2317_v26  ;;  %v1035_v5 = vadd.s32 216, %v2317_v26  ;;  %v1232_v20 = vmul.f32 %v1159_v45, %v1159_v45  ;;  %s1311_s6 = sshll.u32 %s2093_s8, 4  ;;  %s1322_s17 = sshll.u32 %s2094_s11, 4  ;;  %s1312_s6 = int_to_ptr.vmem [resolvable:$true] %s1311_s6  ;;  %s2650_s17 = int_to_ptr.vmem [resolvable:$true] %s1322_s17 }
 0x191   : > { %v1261_v18 = vadd.f32 %v1260_v16, %v1230_v14  ;;  %v1190_v19 = vadd.f32 %v1189_v15, %v1158_v9  ;;  %v1160_v21 = vmul.f32 %v1527_v10, %v2460_v7  ;;  %v1530_v27 = vsel %vm1067_vm8, 1.0, %v2089_v39  ;;  %s1968_s12 = scalar_lea.vmem %s1312_s6, 16  ;;  %p2749_p11 = scmp.ne.s32.totalorder %s2735_s27, 0 }
 0x192   : > { %vm1068_vm9 = vcmp.lt.s32.totalorder %v1033_v4, %v2320_v28  ;;  %v1161_v30 = vmul.f32 %v1528_v48, %v2444_v54  ;;  %v1036_v11 = vadd.s32 224, %v2317_v26  ;;  %v1162_v32 = vmul.f32 %v1529_v55, %v2454_v62  ;;  %p1969_p10 = scmp.ne.s32.totalorder %s1312_s6, %s1968_s12  ;;  %s1974_s24 = scalar_lea.vmem %s1312_s6, 32 }
 0x193   : > { %v1191_v31 = vadd.f32 %v1190_v19, %v1159_v45  ;;  %v1262_v24 = vadd.f32 %v1261_v18, %v1231_v17  ;;  %vm1069_vm10 = vcmp.lt.s32.totalorder %v1034_v47, %v2320_v28  ;;  %vm1070_vm11 = vcmp.lt.s32.totalorder %v1035_v5, %v2320_v28  ;;  %p1975_p9 = scmp.lt.s32.totalorder %s1312_s6, %s1312_s6  ;;  %p1976_p1 = scmp.lt.s32.totalorder %s1974_s24, %s1968_s12 }
 0x194   : > { %v1233_v12 = vmul.f32 %v1160_v21, %v1160_v21  ;;  %v1163_v7 = vmul.f32 %v1530_v27, %v2518_v25  ;;  %v1531_v36 = vsel %vm1068_vm9, 1.0, %v2089_v39  ;;  %v1037_v37 = vadd.s32 232, %v2317_v26  ;;  %p1970_p0 = pnand %p1969_p10, %p2749_p11 }
 0x195   : > { %v1263_v33 = vadd.f32 %v1262_v24, %v1232_v20  ;;  %v1192_v35 = vadd.f32 %v1191_v31, %v1160_v21  ;;  %v1234_v54 = vmul.f32 %v1161_v30, %v1161_v30  ;;  %vm1071_vm12 = vcmp.lt.s32.totalorder %v1036_v11, %v2320_v28  ;;  %v1171_v11 = vld [vmem:[#allocation9] sm:$0x1]  ;;  %p1977_p2 = por %p1976_p1, %p1975_p9 }
 0x196   : > { %v1235_v40 = vmul.f32 %v1162_v32, %v1162_v32  ;;  %v1532_v62 = vsel %vm1069_vm10, 1.0, %v2089_v39  ;;  %v1533_v29 = vsel %vm1070_vm11, 1.0, %v2089_v39  ;;  %v1038_v43 = vadd.s32 240, %v2317_v26  ;;  %p1971_p5 = pneg %p1970_p0 }
 0x197   : > { %v1193_v41 = vadd.f32 %v1192_v35, %v1161_v30  ;;  %v1264_v23 = vadd.f32 %v1263_v33, %v1233_v12  ;;  %v1236_v56 = vmul.f32 %v1163_v7, %v1163_v7  ;;  %v1164_v25 = vmul.f32 %v1531_v36, %v2525_v34  ;;  %v1211_v33 = vld [vmem:[#allocation11] sm:$0x1] }
 0x198   : > { %v1534_v57 = vsel %vm1071_vm12, 1.0, %v2089_v39  ;;  %v1039_v22 = vadd.s32 248, %v2317_v26  ;;  %v1165_v58 = vmul.f32 %v1532_v62, %v2484_v44  ;;  %vm1072_vm13 = vcmp.lt.s32.totalorder %v1037_v37, %v2320_v28  ;;  %p1978_p3 = pnand %p1977_p2, %p1971_p5 }
 0x199   : > { %v1265_v49 = vadd.f32 %v1264_v23, %v1234_v54  ;;  %v1194_v50 = vadd.f32 %v1193_v41, %v1162_v32  ;;  %v1166_v13 = vmul.f32 %v1533_v29, %v2490_v51  ;;  %vm1073_vm14 = vcmp.lt.s32.totalorder %v1038_v43, %v2320_v28 }
 0x19a   : > { %v1237_v2 = vmul.f32 %v1164_v25, %v1164_v25  ;;  %v1167_v3 = vmul.f32 %v1534_v57, %v2536_v52  ;;  %v1535_v34 = vsel %vm1072_vm13, 1.0, %v2089_v39  ;;  %v1238_v8 = vmul.f32 %v1165_v58, %v1165_v58 }
 0x19b   : > { %v1195_v38 = vadd.f32 %v1194_v50, %v1163_v7  ;;  %v1266_v46 = vadd.f32 %v1265_v49, %v1235_v40  ;;  %vm1074_vm15 = vcmp.lt.s32.totalorder %v1039_v22, %v2320_v28  ;;  %v1239_v44 = vmul.f32 %v1166_v13, %v1166_v13 }
 0x19c   : > { %v1536_v9 = vsel %vm1073_vm14, 1.0, %v2089_v39  ;;  %v1240_v51 = vmul.f32 %v1167_v3, %v1167_v3  ;;  %v1168_v59 = vmul.f32 %v1535_v34, %v2550_v42  ;;  %v1537_v45 = vsel %vm1074_vm15, 1.0, %v2089_v39 }
 0x19d   : > { %v1267_v6 = vadd.f32 %v1266_v46, %v1236_v56  ;;  %v1196_v60 = vadd.f32 %v1195_v38, %v1164_v25  ;;  %v1169_v48 = vmul.f32 %v1536_v9, %v2531_v53  ;;  %v1170_v14 = vmul.f32 %v1537_v45, %v2547_v0 }
 0x19e   : > { %v1241_v16 = vmul.f32 %v1168_v59, %v1168_v59 }
 0x19f   : > { %v1197_v61 = vadd.f32 %v1196_v60, %v1165_v58  ;;  %v1268_v26 = vadd.f32 %v1267_v6, %v1237_v2  ;;  %v1242_v28 = vmul.f32 %v1169_v48, %v1169_v48  ;;  %v1243_v47 = vmul.f32 %v1170_v14, %v1170_v14 }
 0x1a1   : > { %v1269_v63 = vadd.f32 %v1268_v26, %v1238_v8  ;;  %v1198_v1 = vadd.f32 %v1197_v61, %v1166_v13 }
 0x1a3   : > { %v1199_v52 = vadd.f32 %v1198_v1, %v1167_v3  ;;  %v1270_v10 = vadd.f32 %v1269_v63, %v1239_v44 }
 0x1a5   : > { %v1271_v4 = vadd.f32 %v1270_v10, %v1240_v51  ;;  %v1200_v15 = vadd.f32 %v1199_v52, %v1168_v59 }
 0x1a7   : > { %v1201_v17 = vadd.f32 %v1200_v15, %v1169_v48  ;;  %v1272_v55 = vadd.f32 %v1271_v4, %v1241_v16 }
 0x1a9   : > { %v1202_v5 = vadd.f32 %v1201_v17, %v1170_v14  ;;  %v1273_v18 = vadd.f32 %v1272_v55, %v1242_v28 }
 0x1ab   : > { %v1274_v19 = vadd.f32 %v1273_v18, %v1243_v47  ;;  %v1203_v20 = vrot.slane %v1202_v5, 4 }
 0x1ad   : > { %v1204_v42 = vadd.f32 %v1203_v20, %v1202_v5  ;;  %v1275_v21 = vrot.slane %v1274_v19, 4 }
 0x1af   : > { %v1205_v39 = vrot.slane %v1204_v42, 2  ;;  %v1276_v27 = vadd.f32 %v1275_v21, %v1274_v19 }
 0x1b1   : > { %v1206_v53 = vadd.f32 %v1205_v39, %v1204_v42  ;;  %v1277_v30 = vrot.slane %v1276_v27, 2 }
 0x1b3   : > { %v1207_v31 = vrot.slane %v1206_v53, 1  ;;  %v1278_v24 = vadd.f32 %v1277_v30, %v1276_v27 }
 0x1b5   : > { %v1208_v0 = vadd.f32 %v1207_v31, %v1206_v53  ;;  %v1279_v32 = vrot.slane %v1278_v24, 1 }
 0x1b7   : > { %v1209_v35 = vadd.f32 %v1208_v0, %v1171_v11  ;;  %v1280_v12 = vadd.f32 %v1279_v32, %v1278_v24 }
 0x1b9   : > { %1210 = vst [vmem:[#allocation9] sm:$0x1] %v1209_v35  ;;  %v1281_v7 = vadd.f32 %v1280_v12, %v1211_v33 }
 0x1ba   : > { %1981 = shalt.err (!%p1978_p3)
}
 0x1bb   : > { %s1982_s30 = scalar_lea.hbm %s2725_s4, 16 }
 0x1bc   : > { %p1983_p7 = scmp.ne.s32.totalorder %s2725_s4, %s1982_s30  ;;  %p1988_p6 = scmp.lt.u32.totalorder %s1982_s30, %s2725_s4 }
 0x1be   : > { %p1984_p13 = pnand %p1983_p7, %p2749_p11 }
 0x1c0   : > { %p1985_p4 = pneg %p1984_p13 }
 0x1c2   : > { %p1990_p8 = pnand %p1988_p6, %p1985_p4 }
 0x1c4   : > { %1993 = shalt.err (!%p1990_p8)
}
 0x1c5   : > { %1773 = dma.vmem_to_hbm [thread:$0]  (%p2749_p11), %s1312_s6, 16, %s2725_s4, [#allocation10]   ;;  %1282 = vst [vmem:[#allocation11] sm:$0x1] %v1281_v7 }
 0x1c6   : > { %s1994_s7 = scalar_lea.vmem %s2650_s17, 16  ;;  %s2000_s8 = scalar_lea.vmem %s2650_s17, 32 }
 0x1c7   : > { %p1995_p12 = scmp.ne.s32.totalorder %s2650_s17, %s1994_s7  ;;  %p2001_p5 = scmp.lt.s32.totalorder %s2650_s17, %s2650_s17 }
 0x1c8   : > { %p2002_p9 = scmp.lt.s32.totalorder %s2000_s8, %s1994_s7 }
 0x1c9   : > { %p1996_p10 = pnand %p1995_p12, %p2749_p11 }
 0x1ca   : > { %p2003_p1 = por %p2002_p9, %p2001_p5 }
 0x1cb   : > { %p1997_p0 = pneg %p1996_p10 }
 0x1cd   : > { %p2004_p2 = pnand %p2003_p1, %p1997_p0 }
 0x1cf   : > { %2007 = shalt.err (!%p2004_p2)
}
 0x1d0   : > { %s2008_s24 = scalar_lea.hbm %s2726_s5, 16 }
 0x1d1   : > { %p2009_p3 = scmp.ne.s32.totalorder %s2726_s5, %s2008_s24  ;;  %p2014_p4 = scmp.lt.u32.totalorder %s2008_s24, %s2726_s5 }
 0x1d3   : > { %p2010_p7 = pnand %p2009_p3, %p2749_p11 }
 0x1d5   : > { %p2011_p13 = pneg %p2010_p7 }
 0x1d7   : > { %p2016_p6 = pnand %p2014_p4, %p2011_p13 }
 0x1d9   : > { %2019 = shalt.err (!%p2016_p6)
}
 0x1da   : > { %1775 = dma.vmem_to_hbm [thread:$0]  (%p2749_p11), %s2650_s17, 16, %s2726_s5, [#allocation10]  }
 0x1db   : > { %2053 = dma.done.wait (%p2749_p11), [#allocation10], 32  }
 0x1dc   : > { %2055 = vsyncadd (%p2749_p11), [#allocation10], 4294967264 }
 0x1dd PF: > { %s1342_s10 = sand.u32 1, %s2062_s18   ;;  %p2750_p8 = scmp.ne.s32.totalorder %s2737_s29, 0 }
 0x1de   : > { %p2751_p12 = scmp.ge.s32.totalorder %s2082_s23, 2  ;;  %s1343_s13 = scalar_lea.sflag [#allocation5], %s1342_s10 }
 0x1e0   : > { %p1790_p10 = pnand %p2751_p12, %p2750_p8 }
 0x1e2   : > { %2057 = dma.done.wait (!%p1790_p10), %s1343_s13, 2048  }
 0x1e3   : > { %2059 = vsyncadd (!%p1790_p10), %s1343_s13, 4294965248  ;;  %s24_s23 = sadd.s32 1, %s2082_s23   ;;  %s2752_s18 = smov %s2066_s19 }
 0x1e4   : > { %p21_p0 = scmp.ge.s32.totalorder %s24_s23, 4   ;;  %s2753_s19 = smov %s2070_s20 }
 0x1e5   : > { %s2754_s20 = smov %s2233_s15  ;;  %s2755_s21 = smov %s2078_s22 }
 0x1e6   : > { %s2756_s22 = smov %s2758_s9  ;;  %23 = sbr.rel (!%p21_p0) target bundleno = 8 (0x8), region = 110 }
 0x1ed   :  { %1348 = vsyncpa [#allocation4], 1 }
 0x1ee   :  { %1350 = vsyncpa [#allocation4 + $0x1], 1 }
 0x1ef   :  { %1351 = vsyncpa [#allocation7], 1 }
 0x1f0   :  { %1352 = vsyncpa [#allocation5], 1 }
 0x1f1   :  { %1354 = vsyncpa [#allocation5 + $0x1], 1 }
 0x1f2   :  { %1355 = vsyncpa [#allocation10], 1 }

</bundles_post_ra>
